<compile_context>
chip_gen: v7x
topology: tpu7x:2x2x1
jax: 0.10.0
libtpu: 0.0.40
codegen_flags: <defaults>
</compile_context>

<pallas_src>
import jax
import jax.numpy as jnp
from jax.experimental import pallas as pl
from jax.experimental.pallas import tpu as pltpu

# model dims
D_MODEL = 256   # encoder output dim (fixed by nn.Linear(256, out_dim))
SE_DIM = 64     # squeeze-excitation bottleneck
KSIZE = 5       # depthwise conv kernel size (time axis, 'same' zero padding)
PAD = KSIZE // 2
OUT_DIM = 40    # out_dim passed to contextnet(out_dim)
LANE = 128

VMEM_LIMIT_BYTES = 48 * 1024 * 1024   # > 16/32 MiB scoped defaults, < 64 MiB v7x physical
VMEM_WORK_BUDGET = 24 * 1024 * 1024   # working-set target when picking the block batch


def _round_up(x, m):
    return (x + m - 1) // m * m


def _pick_block_batch(B, T, feat, n_pad):
    """Batch elements per grid step.

    Targets ~512 rows (BB*T) per step (512-row tiles sit near the HBM roofline),
    budgets VMEM against the double-buffered bf16 I/O tiles *and* the in-kernel
    f32 intermediates, and caps BB at B//2 so the grid always has >= 2 steps
    (DMA/compute pipelining + v7x two-TensorCore sharding).
    """
    want = max(1, -(-512 // T))                       # cdiv(512, T) rows target
    th = T + 2 * PAD
    per_elem = (
        2 * (th * feat * 2 + T * n_pad * 2)           # double-buffered bf16 in/out tiles
        + th * feat * 4 + th * 4                      # x upcast f32 + valid mask
        + T * (feat * 4 + feat * 2)                   # conv acc f32 + bf16 cast
        + T * 3 * D_MODEL * 4                         # h, h3, enc f32
        + T * D_MODEL * 2                             # enc bf16 cast
        + T * n_pad * 4                               # preds f32 before bf16 store
    )
    cap = max(1, VMEM_WORK_BUDGET // max(per_elem, 1))
    bb = max(1, min(B, want, cap))
    if B >= 2:
        bb = max(1, min(bb, B // 2))                  # guarantee grid length >= 2
    while B % bb:                                     # grid needs B % BB == 0
        bb -= 1
    return bb


def contextnet_kernel(x_ref, len_ref, dw_ref, pw_ref, pb_ref,
                      sw1_ref, sb1_ref, sw2_ref, sb2_ref,
                      fw_ref, fb_ref, preds_ref):
    # x_ref    : (BB, T + 2*PAD, F) bf16 — time-halo'd (zero halo), unmasked
    # len_ref  : (BB, 1, 1) int32  — true per-sequence lengths
    # preds_ref: (BB, T, Np) bf16  — lane-dense (Np = 128) output slab
    x = x_ref[...].astype(jnp.float32)          # single upcast (v5e: no bf16 VPU)
    BB, TH, F = x.shape
    T = preds_ref.shape[1]
    Np = preds_ref.shape[2]

    # ---- in-kernel valid-frame mask (replaces the old (B, T, 1) HBM stream) ----
    lens = len_ref[...]                                              # (BB, 1, 1) i32
    t_idx = jax.lax.broadcasted_iota(jnp.int32, (BB, TH, 1), 1) - PAD
    valid_h = jnp.logical_and(t_idx >= 0, t_idx < lens).astype(jnp.float32)
    x = x * valid_h                              # zero frames with t >= length

    # ---- depthwise conv over time: static halo slices (no concat / zero temps) ----
    dw = dw_ref[...]                                        # (KSIZE, 1, F) f32
    acc = x[:, 0:T, :] * dw[0]
    for k in range(1, KSIZE):                               # statically unrolled
        acc = acc + x[:, k:k + T, :] * dw[k]

    # ---- pointwise conv F -> D_MODEL on the MXU (bf16 in / f32 accumulate) ----
    acc2d = acc.reshape(BB * T, F).astype(jnp.bfloat16)
    h = jnp.dot(acc2d, pw_ref[...], preferred_element_type=jnp.float32)
    h = h + pb_ref[...]
    h = h * jax.nn.sigmoid(h)                               # swish, (BB*T, 256) f32
    h3 = h.reshape(BB, T, D_MODEL)

    # ---- squeeze-excitation with length-masked mean over valid frames ----
    mask_t = valid_h[:, PAD:PAD + T, :]                     # (BB, T, 1)
    pooled = jnp.sum(h3 * mask_t, axis=1)                   # (BB, D_MODEL)
    count = jnp.sum(mask_t, axis=1)                         # (BB, 1) true lengths
    pooled = pooled * (1.0 / jnp.maximum(count, 1.0))
    s1 = jnp.dot(pooled, sw1_ref[...],
                 preferred_element_type=jnp.float32) + sb1_ref[...]
    s1 = s1 * jax.nn.sigmoid(s1)                            # swish, (BB, SE_DIM)
    s2 = jnp.dot(s1, sw2_ref[...],
                 preferred_element_type=jnp.float32) + sb2_ref[...]
    gate = jax.nn.sigmoid(s2)                               # (BB, D_MODEL)
    enc = h3 * gate.reshape(BB, 1, D_MODEL)                 # (BB, T, 256)

    # ---- final fc: nn.Linear(256, out_dim), N padded to 128, bf16 store ----
    enc2d = enc.reshape(BB * T, D_MODEL).astype(jnp.bfloat16)
    preds = jnp.dot(enc2d, fw_ref[...], preferred_element_type=jnp.float32)
    preds = preds + fb_ref[...]
    preds_ref[...] = preds.reshape(BB, T, Np).astype(preds_ref.dtype)


def make_params(key, in_feat):
    ks = jax.random.split(key, 10)

    def u(k, shape, fan_in):
        lim = 1.0 / jnp.sqrt(jnp.float32(fan_in))
        return jax.random.uniform(k, shape, jnp.float32, -lim, lim)

    return {
        "dw":  u(ks[0], (KSIZE, in_feat), KSIZE),
        "pw":  u(ks[1], (in_feat, D_MODEL), in_feat),
        "pb":  u(ks[2], (1, D_MODEL), in_feat),
        "sw1": u(ks[3], (D_MODEL, SE_DIM), D_MODEL),
        "sb1": u(ks[4], (1, SE_DIM), D_MODEL),
        "sw2": u(ks[5], (SE_DIM, D_MODEL), SE_DIM),
        "sb2": u(ks[6], (1, D_MODEL), SE_DIM),
        "fw":  u(ks[7], (D_MODEL, OUT_DIM), D_MODEL),   # Linear(256, out_dim).weight.T
        "fb":  u(ks[8], (1, OUT_DIM), D_MODEL),
    }


@jax.jit
def contextnet_forward(params, inputs, input_length):
    """inputs: (B, T, F) f32 channels-last, input_length: (B,) int32
       -> (preds (B, T, OUT_DIM) f32, enc_out_len (B,))."""
    B, T, F = inputs.shape
    Np = _round_up(OUT_DIM, LANE)
    BB = _pick_block_batch(B, T, F, Np)

    # bf16 time-halo'd input; feature dim stays F (full-extent block, so no
    # padded lanes are read from HBM). Length masking happens in-kernel.
    # TODO(synk): allow_input_fusion could fuse this pad+cast into the
    # pallas_call operand; left off to keep lowering conservative.
    x = jnp.pad(inputs.astype(jnp.bfloat16), ((0, 0), (PAD, PAD), (0, 0)))
    lens3 = input_length.astype(jnp.int32).reshape(B, 1, 1)

    # parameters: dw as a (KSIZE, 1, F) view; matmul weights bf16, N padded to 128
    dw = params["dw"].reshape(KSIZE, 1, F)
    pw = params["pw"].astype(jnp.bfloat16)
    fw = jnp.pad(params["fw"], ((0, 0), (0, Np - OUT_DIM))).astype(jnp.bfloat16)
    fb = jnp.pad(params["fb"], ((0, 0), (0, Np - OUT_DIM)))

    flops = (2 * B * T * F * KSIZE             # depthwise conv
             + 2 * B * T * F * D_MODEL         # pointwise conv
             + 4 * B * D_MODEL * SE_DIM        # SE matmuls
             + 2 * B * T * D_MODEL * Np)       # final fc
    bytes_accessed = (x.size * 2 + lens3.size * 4 + B * T * Np * 2
                      + dw.size * 4 + pw.size * 2 + fw.size * 2
                      + (params["pb"].size + params["sw1"].size
                         + params["sb1"].size + params["sw2"].size
                         + params["sb2"].size + fb.size) * 4)
    cost = pl.CostEstimate(
        flops=flops,
        transcendentals=B * T * D_MODEL + B * (SE_DIM + D_MODEL),
        bytes_accessed=bytes_accessed)

    preds_pad = pl.pallas_call(
        contextnet_kernel,
        out_shape=jax.ShapeDtypeStruct((B, T, Np), jnp.bfloat16),
        grid_spec=pltpu.PrefetchScalarGridSpec(
            num_scalar_prefetch=0,
            grid=(B // BB,),
            in_specs=[
                pl.BlockSpec((BB, T + 2 * PAD, F), lambda b: (b, 0, 0)),
                pl.BlockSpec((BB, 1, 1), lambda b: (b, 0, 0)),
                pl.BlockSpec((KSIZE, 1, F), lambda b: (0, 0, 0)),
                pl.BlockSpec((F, D_MODEL), lambda b: (0, 0)),
                pl.BlockSpec((1, D_MODEL), lambda b: (0, 0)),
                pl.BlockSpec((D_MODEL, SE_DIM), lambda b: (0, 0)),
                pl.BlockSpec((1, SE_DIM), lambda b: (0, 0)),
                pl.BlockSpec((SE_DIM, D_MODEL), lambda b: (0, 0)),
                pl.BlockSpec((1, D_MODEL), lambda b: (0, 0)),
                pl.BlockSpec((D_MODEL, Np), lambda b: (0, 0)),
                pl.BlockSpec((1, Np), lambda b: (0, 0)),
            ],
            out_specs=pl.BlockSpec((BB, T, Np), lambda b: (b, 0, 0)),
        ),
        compiler_params=pltpu.CompilerParams(
            dimension_semantics=("parallel",),
            vmem_limit_bytes=VMEM_LIMIT_BYTES),
        cost_estimate=cost,
    )(x, lens3, dw, pw, params["pb"], params["sw1"], params["sb1"],
      params["sw2"], params["sb2"], fw, fb)

    preds = preds_pad[..., :OUT_DIM].astype(jnp.float32)     # crop pad, upcast

    # TODO(synk): ContextnetEncoder source not provided; the real encoder applies
    # temporal subsampling to the lengths — the stride-1 block here keeps them.
    enc_out_len = input_length
    return preds, enc_out_len


if __name__ == "__main__":
    B, T, F = 2, 16, 80
    key = jax.random.PRNGKey(0)
    k_param, k_x = jax.random.split(key)

    params = make_params(k_param, F)
    inputs = jax.random.normal(k_x, (B, T, F), jnp.float32)
    input_length = jnp.array([16, 12], dtype=jnp.int32)

    preds, enc_out_len = contextnet_forward(params, inputs, input_length)
    jax.block_until_ready(preds)
    jax.block_until_ready(enc_out_len)

    assert preds.shape == (B, T, OUT_DIM)
    assert preds.dtype == jnp.float32
    assert enc_out_len.shape == (B,)
    print("KERNEL_OK")
</pallas_src>

<mosaic_0001>
module attributes {stable_mosaic.version = 11 : i64} {
  func.func @contextnet_kernel(%arg0: i32, %arg1: memref<1x20x80xbf16, #tpu.memory_space<vmem>>, %arg2: memref<1x1x1xi32, #tpu.memory_space<vmem>>, %arg3: memref<5x1x80xf32, #tpu.memory_space<vmem>>, %arg4: memref<80x256xbf16, #tpu.memory_space<vmem>>, %arg5: memref<1x256xf32, #tpu.memory_space<vmem>>, %arg6: memref<256x64xf32, #tpu.memory_space<vmem>>, %arg7: memref<1x64xf32, #tpu.memory_space<vmem>>, %arg8: memref<64x256xf32, #tpu.memory_space<vmem>>, %arg9: memref<1x256xf32, #tpu.memory_space<vmem>>, %arg10: memref<256x128xbf16, #tpu.memory_space<vmem>>, %arg11: memref<1x128xf32, #tpu.memory_space<vmem>>, %arg12: memref<1x16x128xbf16, #tpu.memory_space<vmem>>) attributes {dimension_semantics = [#tpu.dimension_semantics<parallel>], iteration_bounds = array<i64: 2>, scalar_prefetch = 0 : i64, scratch_operands = 0 : i64, tpu.core_type = #tpu.core_type<tc>, window_params = [{transform_indices = @transform_0, window_bounds = array<i64: 1, 20, 80>}, {transform_indices = @transform_1, window_bounds = array<i64: 1, 1, 1>}, {pipeline_mode = #tpu.pipeline_mode<synchronous>, transform_indices = @transform_2, window_bounds = array<i64: 5, 1, 80>}, {pipeline_mode = #tpu.pipeline_mode<synchronous>, transform_indices = @transform_3, window_bounds = array<i64: 80, 256>}, {pipeline_mode = #tpu.pipeline_mode<synchronous>, transform_indices = @transform_4, window_bounds = array<i64: 1, 256>}, {pipeline_mode = #tpu.pipeline_mode<synchronous>, transform_indices = @transform_5, window_bounds = array<i64: 256, 64>}, {pipeline_mode = #tpu.pipeline_mode<synchronous>, transform_indices = @transform_6, window_bounds = array<i64: 1, 64>}, {pipeline_mode = #tpu.pipeline_mode<synchronous>, transform_indices = @transform_7, window_bounds = array<i64: 64, 256>}, {pipeline_mode = #tpu.pipeline_mode<synchronous>, transform_indices = @transform_8, window_bounds = array<i64: 1, 256>}, {pipeline_mode = #tpu.pipeline_mode<synchronous>, transform_indices = @transform_9, window_bounds = array<i64: 256, 128>}, {pipeline_mode = #tpu.pipeline_mode<synchronous>, transform_indices = @transform_10, window_bounds = array<i64: 1, 128>}, {transform_indices = @transform_11, window_bounds = array<i64: 1, 16, 128>}]} {
    %c0 = arith.constant 0 : index
    %c0_0 = arith.constant 0 : index
    %c0_1 = arith.constant 0 : index
    %0 = vector.load %arg1[%c0, %c0_0, %c0_1] : memref<1x20x80xbf16, #tpu.memory_space<vmem>>, vector<1x20x80xbf16>
    %1 = arith.extf %0 : vector<1x20x80xbf16> to vector<1x20x80xf32>
    %c0_2 = arith.constant 0 : index
    %c0_3 = arith.constant 0 : index
    %c0_4 = arith.constant 0 : index
    %2 = vector.load %arg2[%c0_2, %c0_3, %c0_4] : memref<1x1x1xi32, #tpu.memory_space<vmem>>, vector<1x1x1xi32>
    %3 = tpu.iota {dimensions = array<i32: 1>} : vector<1x20x1xi32>
    %c2_i32 = arith.constant 2 : i32
    %4 = vector.broadcast %c2_i32 : i32 to vector<1x20x1xi32>
    %5 = arith.subi %3, %4 : vector<1x20x1xi32>
    %c0_i32 = arith.constant 0 : i32
    %6 = vector.broadcast %c0_i32 : i32 to vector<1x20x1xi32>
    %7 = arith.cmpi sge, %5, %6 : vector<1x20x1xi32>
    %8 = vector.broadcast %2 : vector<1x1x1xi32> to vector<1x20x1xi32>
    %9 = arith.cmpi slt, %5, %8 : vector<1x20x1xi32>
    %10 = arith.andi %7, %9 : vector<1x20x1xi1>
    %11 = arith.extui %10 : vector<1x20x1xi1> to vector<1x20x1xi32>
    %12 = arith.sitofp %11 : vector<1x20x1xi32> to vector<1x20x1xf32>
    %13 = vector.broadcast %12 : vector<1x20x1xf32> to vector<1x20x80xf32>
    %14 = arith.mulf %1, %13 : vector<1x20x80xf32>
    %c0_5 = arith.constant 0 : index
    %c0_6 = arith.constant 0 : index
    %c0_7 = arith.constant 0 : index
    %15 = vector.load %arg3[%c0_5, %c0_6, %c0_7] : memref<5x1x80xf32, #tpu.memory_space<vmem>>, vector<5x1x80xf32>
    %16 = vector.extract_strided_slice %14 {offsets = [0, 0, 0], sizes = [1, 16, 80], strides = [1, 1, 1]} : vector<1x20x80xf32> to vector<1x16x80xf32>
    %17 = vector.extract_strided_slice %15 {offsets = [0, 0, 0], sizes = [1, 1, 80], strides = [1, 1, 1]} : vector<5x1x80xf32> to vector<1x1x80xf32>
    %18 = vector.shape_cast %17 : vector<1x1x80xf32> to vector<1x80xf32>
    %19 = vector.shape_cast %18 : vector<1x80xf32> to vector<1x1x80xf32>
    %20 = vector.broadcast %19 : vector<1x1x80xf32> to vector<1x16x80xf32>
    %21 = arith.mulf %16, %20 : vector<1x16x80xf32>
    %22 = vector.extract_strided_slice %14 {offsets = [0, 1, 0], sizes = [1, 16, 80], strides = [1, 1, 1]} : vector<1x20x80xf32> to vector<1x16x80xf32>
    %23 = vector.extract_strided_slice %15 {offsets = [1, 0, 0], sizes = [1, 1, 80], strides = [1, 1, 1]} : vector<5x1x80xf32> to vector<1x1x80xf32>
    %24 = vector.shape_cast %23 : vector<1x1x80xf32> to vector<1x80xf32>
    %25 = vector.shape_cast %24 : vector<1x80xf32> to vector<1x1x80xf32>
    %26 = vector.broadcast %25 : vector<1x1x80xf32> to vector<1x16x80xf32>
    %27 = arith.mulf %22, %26 : vector<1x16x80xf32>
    %28 = arith.addf %21, %27 : vector<1x16x80xf32>
    %29 = vector.extract_strided_slice %14 {offsets = [0, 2, 0], sizes = [1, 16, 80], strides = [1, 1, 1]} : vector<1x20x80xf32> to vector<1x16x80xf32>
    %30 = vector.extract_strided_slice %15 {offsets = [2, 0, 0], sizes = [1, 1, 80], strides = [1, 1, 1]} : vector<5x1x80xf32> to vector<1x1x80xf32>
    %31 = vector.shape_cast %30 : vector<1x1x80xf32> to vector<1x80xf32>
    %32 = vector.shape_cast %31 : vector<1x80xf32> to vector<1x1x80xf32>
    %33 = vector.broadcast %32 : vector<1x1x80xf32> to vector<1x16x80xf32>
    %34 = arith.mulf %29, %33 : vector<1x16x80xf32>
    %35 = arith.addf %28, %34 : vector<1x16x80xf32>
    %36 = vector.extract_strided_slice %14 {offsets = [0, 3, 0], sizes = [1, 16, 80], strides = [1, 1, 1]} : vector<1x20x80xf32> to vector<1x16x80xf32>
    %37 = vector.extract_strided_slice %15 {offsets = [3, 0, 0], sizes = [1, 1, 80], strides = [1, 1, 1]} : vector<5x1x80xf32> to vector<1x1x80xf32>
    %38 = vector.shape_cast %37 : vector<1x1x80xf32> to vector<1x80xf32>
    %39 = vector.shape_cast %38 : vector<1x80xf32> to vector<1x1x80xf32>
    %40 = vector.broadcast %39 : vector<1x1x80xf32> to vector<1x16x80xf32>
    %41 = arith.mulf %36, %40 : vector<1x16x80xf32>
    %42 = arith.addf %35, %41 : vector<1x16x80xf32>
    %43 = vector.extract_strided_slice %14 {offsets = [0, 4, 0], sizes = [1, 16, 80], strides = [1, 1, 1]} : vector<1x20x80xf32> to vector<1x16x80xf32>
    %44 = vector.extract_strided_slice %15 {offsets = [4, 0, 0], sizes = [1, 1, 80], strides = [1, 1, 1]} : vector<5x1x80xf32> to vector<1x1x80xf32>
    %45 = vector.shape_cast %44 : vector<1x1x80xf32> to vector<1x80xf32>
    %46 = vector.shape_cast %45 : vector<1x80xf32> to vector<1x1x80xf32>
    %47 = vector.broadcast %46 : vector<1x1x80xf32> to vector<1x16x80xf32>
    %48 = arith.mulf %43, %47 : vector<1x16x80xf32>
    %49 = arith.addf %42, %48 : vector<1x16x80xf32>
    %50 = vector.shape_cast %49 : vector<1x16x80xf32> to vector<16x80xf32>
    %51 = arith.truncf %50 : vector<16x80xf32> to vector<16x80xbf16>
    %c0_8 = arith.constant 0 : index
    %c0_9 = arith.constant 0 : index
    %52 = vector.load %arg4[%c0_8, %c0_9] : memref<80x256xbf16, #tpu.memory_space<vmem>>, vector<80x256xbf16>
    %cst = arith.constant dense<0.000000e+00> : vector<16x256xf32>
    %53 = tpu.matmul %51, %52, %cst {dimension_numbers = #tpu.dot_dimension_numbers<[1], [0], [0], [1], [0, 0, 1, 1], [], []>} : vector<16x80xbf16>, vector<80x256xbf16>, vector<16x256xf32> -> vector<16x256xf32>
    %c0_10 = arith.constant 0 : index
    %c0_11 = arith.constant 0 : index
    %54 = vector.load %arg5[%c0_10, %c0_11] : memref<1x256xf32, #tpu.memory_space<vmem>>, vector<1x256xf32>
    %55 = vector.broadcast %54 : vector<1x256xf32> to vector<16x256xf32>
    %56 = arith.addf %53, %55 : vector<16x256xf32>
    %57 = arith.negf %56 : vector<16x256xf32>
    %58 = math.exp %57 : vector<16x256xf32>
    %cst_12 = arith.constant 1.000000e+00 : f32
    %59 = vector.broadcast %cst_12 : f32 to vector<16x256xf32>
    %60 = arith.addf %59, %58 : vector<16x256xf32>
    %61 = arith.divf %59, %60 : vector<16x256xf32>
    %62 = arith.mulf %56, %61 : vector<16x256xf32>
    %63 = vector.shape_cast %62 : vector<16x256xf32> to vector<1x16x256xf32>
    %64 = vector.extract_strided_slice %12 {offsets = [0, 2, 0], sizes = [1, 16, 1], strides = [1, 1, 1]} : vector<1x20x1xf32> to vector<1x16x1xf32>
    %65 = vector.broadcast %64 : vector<1x16x1xf32> to vector<1x16x256xf32>
    %66 = arith.mulf %63, %65 : vector<1x16x256xf32>
    %cst_13 = arith.constant dense<0.000000e+00> : vector<1x256xf32>
    %67 = vector.multi_reduction <add>, %66, %cst_13 [1] : vector<1x16x256xf32> to vector<1x256xf32>
    %cst_14 = arith.constant dense<0.000000e+00> : vector<1x1xf32>
    %68 = vector.multi_reduction <add>, %64, %cst_14 [1] : vector<1x16x1xf32> to vector<1x1xf32>
    %cst_15 = arith.constant 1.000000e+00 : f32
    %69 = vector.broadcast %cst_15 : f32 to vector<1x1xf32>
    %70 = arith.maximumf %68, %69 : vector<1x1xf32>
    %cst_16 = arith.constant 1.000000e+00 : f32
    %71 = vector.broadcast %cst_16 : f32 to vector<1x1xf32>
    %72 = arith.divf %71, %70 : vector<1x1xf32>
    %73 = vector.broadcast %72 : vector<1x1xf32> to vector<1x256xf32>
    %74 = arith.mulf %67, %73 : vector<1x256xf32>
    %c0_17 = arith.constant 0 : index
    %c0_18 = arith.constant 0 : index
    %75 = vector.load %arg6[%c0_17, %c0_18] : memref<256x64xf32, #tpu.memory_space<vmem>>, vector<256x64xf32>
    %cst_19 = arith.constant dense<0.000000e+00> : vector<1x64xf32>
    %76 = tpu.matmul %74, %75, %cst_19 {dimension_numbers = #tpu.dot_dimension_numbers<[1], [0], [0], [1], [0, 0, 1, 1], [], []>} : vector<1x256xf32>, vector<256x64xf32>, vector<1x64xf32> -> vector<1x64xf32>
    %c0_20 = arith.constant 0 : index
    %c0_21 = arith.constant 0 : index
    %77 = vector.load %arg7[%c0_20, %c0_21] : memref<1x64xf32, #tpu.memory_space<vmem>>, vector<1x64xf32>
    %78 = arith.addf %76, %77 : vector<1x64xf32>
    %79 = arith.negf %78 : vector<1x64xf32>
    %80 = math.exp %79 : vector<1x64xf32>
    %cst_22 = arith.constant 1.000000e+00 : f32
    %81 = vector.broadcast %cst_22 : f32 to vector<1x64xf32>
    %82 = arith.addf %81, %80 : vector<1x64xf32>
    %83 = arith.divf %81, %82 : vector<1x64xf32>
    %84 = arith.mulf %78, %83 : vector<1x64xf32>
    %c0_23 = arith.constant 0 : index
    %c0_24 = arith.constant 0 : index
    %85 = vector.load %arg8[%c0_23, %c0_24] : memref<64x256xf32, #tpu.memory_space<vmem>>, vector<64x256xf32>
    %cst_25 = arith.constant dense<0.000000e+00> : vector<1x256xf32>
    %86 = tpu.matmul %84, %85, %cst_25 {dimension_numbers = #tpu.dot_dimension_numbers<[1], [0], [0], [1], [0, 0, 1, 1], [], []>} : vector<1x64xf32>, vector<64x256xf32>, vector<1x256xf32> -> vector<1x256xf32>
    %c0_26 = arith.constant 0 : index
    %c0_27 = arith.constant 0 : index
    %87 = vector.load %arg9[%c0_26, %c0_27] : memref<1x256xf32, #tpu.memory_space<vmem>>, vector<1x256xf32>
    %88 = arith.addf %86, %87 : vector<1x256xf32>
    %89 = arith.negf %88 : vector<1x256xf32>
    %90 = math.exp %89 : vector<1x256xf32>
    %cst_28 = arith.constant 1.000000e+00 : f32
    %91 = vector.broadcast %cst_28 : f32 to vector<1x256xf32>
    %92 = arith.addf %91, %90 : vector<1x256xf32>
    %93 = arith.divf %91, %92 : vector<1x256xf32>
    %94 = vector.shape_cast %93 : vector<1x256xf32> to vector<1x1x256xf32>
    %95 = vector.broadcast %94 : vector<1x1x256xf32> to vector<1x16x256xf32>
    %96 = arith.mulf %63, %95 : vector<1x16x256xf32>
    %97 = vector.shape_cast %96 : vector<1x16x256xf32> to vector<16x256xf32>
    %98 = arith.truncf %97 : vector<16x256xf32> to vector<16x256xbf16>
    %c0_29 = arith.constant 0 : index
    %c0_30 = arith.constant 0 : index
    %99 = vector.load %arg10[%c0_29, %c0_30] : memref<256x128xbf16, #tpu.memory_space<vmem>>, vector<256x128xbf16>
    %cst_31 = arith.constant dense<0.000000e+00> : vector<16x128xf32>
    %100 = tpu.matmul %98, %99, %cst_31 {dimension_numbers = #tpu.dot_dimension_numbers<[1], [0], [0], [1], [0, 0, 1, 1], [], []>} : vector<16x256xbf16>, vector<256x128xbf16>, vector<16x128xf32> -> vector<16x128xf32>
    %c0_32 = arith.constant 0 : index
    %c0_33 = arith.constant 0 : index
    %101 = vector.load %arg11[%c0_32, %c0_33] : memref<1x128xf32, #tpu.memory_space<vmem>>, vector<1x128xf32>
    %102 = vector.broadcast %101 : vector<1x128xf32> to vector<16x128xf32>
    %103 = arith.addf %100, %102 : vector<16x128xf32>
    %104 = vector.shape_cast %103 : vector<16x128xf32> to vector<1x16x128xf32>
    %105 = arith.truncf %104 : vector<1x16x128xf32> to vector<1x16x128xbf16>
    %c0_34 = arith.constant 0 : index
    %c0_35 = arith.constant 0 : index
    %c0_36 = arith.constant 0 : index
    %106 = vector.load %arg12[%c0_34, %c0_35, %c0_36] : memref<1x16x128xbf16, #tpu.memory_space<vmem>>, vector<1x16x128xbf16>
    tpu.vector_store %arg12[%c0_34, %c0_35, %c0_36], %105 {strides = array<i32>} : memref<1x16x128xbf16, #tpu.memory_space<vmem>>, vector<1x16x128xbf16>,
    return
  }
  func.func @transform_0(%arg0: i32) -> (i32, i32, i32) {
    %c0_i32 = arith.constant 0 : i32
    %c0_i32_0 = arith.constant 0 : i32
    %c0_i32_1 = arith.constant 0 : i32
    return %arg0, %c0_i32, %c0_i32_0 : i32, i32, i32
  }
  func.func @transform_1(%arg0: i32) -> (i32, i32, i32) {
    %c0_i32 = arith.constant 0 : i32
    %c0_i32_0 = arith.constant 0 : i32
    %c0_i32_1 = arith.constant 0 : i32
    return %arg0, %c0_i32, %c0_i32_0 : i32, i32, i32
  }
  func.func @transform_2(%arg0: i32) -> (i32, i32, i32) {
    %c0_i32 = arith.constant 0 : i32
    %c0_i32_0 = arith.constant 0 : i32
    %c0_i32_1 = arith.constant 0 : i32
    %c0_i32_2 = arith.constant 0 : i32
    return %c0_i32, %c0_i32_0, %c0_i32_1 : i32, i32, i32
  }
  func.func @transform_3(%arg0: i32) -> (i32, i32) {
    %c0_i32 = arith.constant 0 : i32
    %c0_i32_0 = arith.constant 0 : i32
    %c0_i32_1 = arith.constant 0 : i32
    return %c0_i32, %c0_i32_0 : i32, i32
  }
  func.func @transform_4(%arg0: i32) -> (i32, i32) {
    %c0_i32 = arith.constant 0 : i32
    %c0_i32_0 = arith.constant 0 : i32
    %c0_i32_1 = arith.constant 0 : i32
    return %c0_i32, %c0_i32_0 : i32, i32
  }
  func.func @transform_5(%arg0: i32) -> (i32, i32) {
    %c0_i32 = arith.constant 0 : i32
    %c0_i32_0 = arith.constant 0 : i32
    %c0_i32_1 = arith.constant 0 : i32
    return %c0_i32, %c0_i32_0 : i32, i32
  }
  func.func @transform_6(%arg0: i32) -> (i32, i32) {
    %c0_i32 = arith.constant 0 : i32
    %c0_i32_0 = arith.constant 0 : i32
    %c0_i32_1 = arith.constant 0 : i32
    return %c0_i32, %c0_i32_0 : i32, i32
  }
  func.func @transform_7(%arg0: i32) -> (i32, i32) {
    %c0_i32 = arith.constant 0 : i32
    %c0_i32_0 = arith.constant 0 : i32
    %c0_i32_1 = arith.constant 0 : i32
    return %c0_i32, %c0_i32_0 : i32, i32
  }
  func.func @transform_8(%arg0: i32) -> (i32, i32) {
    %c0_i32 = arith.constant 0 : i32
    %c0_i32_0 = arith.constant 0 : i32
    %c0_i32_1 = arith.constant 0 : i32
    return %c0_i32, %c0_i32_0 : i32, i32
  }
  func.func @transform_9(%arg0: i32) -> (i32, i32) {
    %c0_i32 = arith.constant 0 : i32
    %c0_i32_0 = arith.constant 0 : i32
    %c0_i32_1 = arith.constant 0 : i32
    return %c0_i32, %c0_i32_0 : i32, i32
  }
  func.func @transform_10(%arg0: i32) -> (i32, i32) {
    %c0_i32 = arith.constant 0 : i32
    %c0_i32_0 = arith.constant 0 : i32
    %c0_i32_1 = arith.constant 0 : i32
    return %c0_i32, %c0_i32_0 : i32, i32
  }
  func.func @transform_11(%arg0: i32) -> (i32, i32, i32) {
    %c0_i32 = arith.constant 0 : i32
    %c0_i32_0 = arith.constant 0 : i32
    %c0_i32_1 = arith.constant 0 : i32
    return %arg0, %c0_i32, %c0_i32_0 : i32, i32, i32
  }
}

</mosaic_0001>

<bundles_post_ra>
// kernel: contextnet_forward.1
= control target key start
LH: loop header
LB: loop body
LE: loop exit
PB: predicated region body
PF: predicated region fallthrough
CT: control target
= control target key end

     0   :  { %s1569_s17 = smov 0   ;;  %s1896_s0 = inlined_call_operand.vmem [shape: bf16[2,20,80], index: 0, kind: input, shape index: {}]   ;;  %s1897_s1 = inlined_call_operand.vmem [shape: s32[2,1,1], index: 1, kind: input, shape index: {}]   ;;  %s1898_s2 = inlined_call_operand.vmem [shape: f32[5,1,80], index: 2, kind: input, shape index: {}]   ;;  %s1899_s3 = inlined_call_operand.vmem [shape: bf16[80,256], index: 3, kind: input, shape index: {}]   ;;  %s1900_s4 = inlined_call_operand.vmem [shape: f32[1,256], index: 4, kind: input, shape index: {}]   ;;  %s1901_s5 = inlined_call_operand.vmem [shape: f32[256,64], index: 5, kind: input, shape index: {}]   ;;  %s1902_s6 = inlined_call_operand.vmem [shape: f32[1,64], index: 6, kind: input, shape index: {}]   ;;  %s1903_s7 = inlined_call_operand.vmem [shape: f32[64,256], index: 7, kind: input, shape index: {}]   ;;  %s1904_s8 = inlined_call_operand.vmem [shape: f32[1,256], index: 8, kind: input, shape index: {}]   ;;  %s1905_s9 = inlined_call_operand.vmem [shape: bf16[256,128], index: 9, kind: input, shape index: {}]   ;;  %s1906_s10 = inlined_call_operand.vmem [shape: f32[1,128], index: 10, kind: input, shape index: {}]   ;;  %s1907_s11 = inlined_call_operand.vmem [shape: bf16[2,16,128], index: 11, kind: output, shape index: {}]  }
   0x1 LB: > { %s1243_s18 = sadd.s32 4294967295, %s1505_s17   ;;  %p1247_p0 = scmp.ge.s32.totalorder %s1505_s17, 1  ;;  %s1505_s17 = sphi %s1569_s17, %s21_s17  }
   0x2   : > { %p345_p1 = scmp.lt.s32.totalorder %s1505_s17, 3 }
   0x4   : > { %p346_p2 = pnand %p1247_p0, %p345_p1 }
   0x5   : > { %p388_p3 = scmp.lt.s32.totalorder (!%p346_p2), %s1243_s18, 1  ;;  %v409_v0 = vlaneseq (!%p346_p2)  ;;  %v1507_v1 = vmov (!%p346_p2), 0   ;;  %v1508_v9 = vmov (!%p346_p2), 0.0   ;;  %vm734_vm5 = vcmask (!%p346_p2), 7168   ;;  %v1438_v17 = vld [vmem:[%s1899_s3 + $0x4] ss:$8 sps:$4 sm:$0xff] (!%p346_p2)  }
   0x6   : > { %349 = sbr.rel (%p346_p2) target bundleno = 1149 (0x47d), region = 64  ;;  %1431 = vset.pattern.permute.xlu0 (!%p346_p2), %v1507_v1  ;;  %663 = vmatprep.mubr.bf16.mxu0 (!%p346_p2), %v1507_v1  ;;  %vm500_vm6 = vcmask (!%p346_p2), 1045504   ;;  %v1440_v20 = vld [vmem:[%s1899_s3] ss:$8 sps:$4 sm:$0xff] (!%p346_p2)   ;;  %v1441_v25 = vld [vmem:[%s1899_s3 + $0x14] ss:$8 sps:$4 sm:$0xff] (!%p346_p2)  }
   0x7   : > { %v1579_v2 = vshrl.u32 (!%p346_p2), %v409_v0, 7  ;;  %1437 = vset.pattern.permute.xlu1 (!%p346_p2), %v1507_v1  ;;  %631 = vmatprep.subr.bf16.mxu0 (!%p346_p2), %v1438_v17  ;;  %v1443_v27 = vld [vmem:[%s1899_s3 + $0x10] ss:$8 sps:$4 sm:$0xff] (!%p346_p2)   ;;  %v1444_v28 = vld [vmem:[%s1899_s3 + $0x24] ss:$8 sps:$4 sm:$0xff] (!%p346_p2)   ;;  %vm478_vm7 = vcmask (!%p346_p2), 1046528  }
   0x8   : > { %632 = vmatpush1.bf16.msra.mxu0 (!%p346_p2), %v1440_v20  ;;  %v1446_v29 = vld [vmem:[%s1899_s3 + $0x20] ss:$8 sps:$4 sm:$0xff] (!%p346_p2)   ;;  %v1447_v30 = vld [vmem:[%s1899_s3 + $0x34] ss:$8 sps:$4 sm:$0xff] (!%p346_p2)   ;;  %v1449_v32 = vld [vmem:[%s1899_s3 + $0x30] ss:$8 sps:$4 sm:$0xff] (!%p346_p2)  }
   0x9   : > { %v411_v3 = vadd.s32 (!%p346_p2), 8, %v1579_v2  ;;  %v1251_v4 = vadd.s32 (!%p346_p2), 4294967294, %v1579_v2  ;;  %v412_v5 = vadd.s32 (!%p346_p2), 16, %v1579_v2  ;;  %633 = vmatprep.subr.bf16.mxu0 (!%p346_p2), %v1441_v25  ;;  %v1450_v33 = vld [vmem:[%s1899_s3 + $0x44] ss:$8 sps:$4 sm:$0xff] (!%p346_p2)   ;;  %vm522_vm8 = vcmask (!%p346_p2), 1044480  }
   0xa   : > { %v1452_v35 = vld [vmem:[%s1899_s3 + $0x40] ss:$8 sps:$4 sm:$0xff] (!%p346_p2)   ;;  %v1262_v63 = vld [vmem:[%s1898_s2 + $0x4] ss:$0 sm:$0xff] (!%p346_p2)  ;;  %vm544_vm9 = vcmask (!%p346_p2), 1043456   ;;  %vm627_vm10 = vcmask (!%p346_p2), 654336  }
   0xb   : > { %v1252_v7 = vadd.s32 (!%p346_p2), 4294967294, %v411_v3  ;;  %vm416_vm0 = vcmp.ge.s32.totalorder (!%p346_p2), %v1251_v4, 0  ;;  %v1253_v8 = vadd.s32 (!%p346_p2), 4294967294, %v412_v5  ;;  %v1259_v48 = vld [vmem:[%s1898_s2 + $0x1] ss:$0 sm:$0xff] (!%p346_p2)  ;;  %vm892_vm11 = vcmask (!%p346_p2), 523264  }
   0xc   : > { %634 = vmatpush1.bf16.msra.mxu0 (!%p346_p2), %v1443_v27  ;;  %v1260_v51 = vld [vmem:[%s1898_s2 + $0x2] ss:$0 sm:$0xff] (!%p346_p2)  ;;  %v1258_v52 = vld [vmem:[%s1898_s2] ss:$0 sm:$0xff] (!%p346_p2)  ;;  %v1261_v55 = vld [vmem:[%s1898_s2 + $0x3] ss:$0 sm:$0xff] (!%p346_p2) }
   0xd   : > { %s1909_s18 = smov (!%p388_p3, %s1243_s18), 1  ;;  %635 = vmatprep.subr.bf16.mxu0 %v1444_v28 }
   0xe   : > { %s395_s21 = scalar_lea.vmem %s1897_s1, %s1909_s18  ;;  %s1420_s25 = smul.u32 12, %s1909_s18 }
   0xf   : > { %v1254_v6 = vld [vmem:[%s395_s21] ss:$0 sm:$0xff]  ;;  %s1303_s22 = sshll.u32 %s1909_s18, 3 }
  0x10   : > { %vm423_vm1 = vcmp.lt.s32.totalorder %v1251_v4, %v1254_v6  ;;  %vm424_vm3 = vcmp.lt.s32.totalorder %v1252_v7, %v1254_v6  ;;  %vm425_vm4 = vcmp.lt.s32.totalorder %v1253_v8, %v1254_v6  ;;  %636 = vmatpush1.bf16.msra.mxu0 %v1446_v29  ;;  %s392_s28 = scalar_lea.vmem %s1896_s0, %s1420_s25  ;;  %s400_s25 = scalar_lea.vmem %s1907_s11, %s1303_s22 }
  0x11   : > { %vm426_vm2 = vmand %vm416_vm0, %vm423_vm1  ;;  %v1256_v11 = vsel %vm424_vm3, 1.0, %v1508_v9  ;;  %v1257_v13 = vsel %vm425_vm4, 1.0, %v1508_v9  ;;  %637 = vmatprep.subr.bf16.mxu0 %v1447_v30  ;;  %v1307_v40 = vld [vmem:[%s392_s28] sm:$0xff]   ;;  %v404_v41 = vld [vmem:[%s392_s28 + $0x8] sm:$0x3] }
  0x12   : > { %v1255_v10 = vsel %vm426_vm2, 1.0, %v1508_v9  ;;  %v728_v14 = vrot.slane %v1256_v11, 2  ;;  %v730_v16 = vrot.slane %v1257_v13, 2  ;;  %v1308_v42 = vunpack.c.l.bf16 %v1307_v40 }
  0x13   : > { %v727_v12 = vrot.slane %v1255_v10, 2  ;;  %v1432_v15 = vpack.i.bf16 %v1256_v11, %v1255_v10  ;;  %v1309_v43 = vunpack.c.h.bf16 %v1307_v40  ;;  %v407_v47 = vunpack.c.l.bf16 %v404_v41 }
  0x14   : > { %v731_v19 = vsel %vm500_vm6, %v728_v14, %v730_v16  ;;  %638 = vmatpush1.bf16.msra.mxu0 %v1449_v32 }
  0x15   : > { %1433 = vperm.xlu0 %1431, %v1432_v15   ;;  %v729_v18 = vsel %vm500_vm6, %v727_v12, %v728_v14  ;;  %v736_v22 = vsel %vm734_vm5, %v731_v19, 0.0  ;;  %639 = vmatprep.subr.bf16.mxu0 %v1450_v33 }
  0x16   : > { %v735_v21 = vsel %vm734_vm5, %v729_v18, 0.0 }
  0x17   : > { %v737_v23 = vadd.f32 %v736_v22, %v735_v21 }
  0x18   : > { %640 = vmatpush1.bf16.msra.mxu0 %v1452_v35 }
  0x19   : > { %447 = vperm.xlu0 %1431, %v1257_v13   ;;  %v738_v24 = vrot.slane %v737_v23, 4 }
  0x1b   : > { %v739_v26 = vadd.f32 %v738_v24, %v737_v23 }
  0x1d   : > { %v740_v31 = vrot.slane %v739_v26, 2 }
  0x1f   : > { %v741_v34 = vadd.f32 %v740_v31, %v739_v26 }
  0x21   : > { %v742_v36 = vrot.slane %v741_v34, 1 }
  0x23   : > { %v743_v37 = vadd.f32 %v742_v36, %v741_v34 }
  0x25   : > { %v744_v38 = vmax.f32 %v743_v37, 1.0 }
  0x27   : > { %1469 = vrcp.f32 %v744_v38 }
  0x31   : > { %v1470_v39 = vpop.eup %1469 }
  0x32   : > { %749 = vperm.xlu1 %1437, %v1470_v39  }
  0x94   : > { %v1434_v44 = vpop.permute.xlu0 %1433 }
  0x95   : > { %v1436_v45 = vunpack.i.h.bf16 %v1434_v44  ;;  %v1435_v46 = vunpack.i.l.bf16 %v1434_v44  ;;  %v771_v44 = vld [vmem:[%s1901_s5 + $0x88] sm:$0xff] }
  0x97   : > { %v450_v49 = vmul.f32 %v1435_v46, %v1308_v42  ;;  %v451_v50 = vmul.f32 %v1436_v45, %v1309_v43  ;;  %v703_v54 = vrot.slane %v1436_v45, 2  ;;  %v702_v58 = vrot.slane %v1435_v46, 2  ;;  %v770_v43 = vld [vmem:[%s1901_s5 + $0x80] sm:$0xff] }
  0x98   : > { %v448_v53 = vpop.permute.xlu0 %447  ;;  %v1372_v45 = vpack.c.bf16 %v771_v44, %v770_v43  ;;  %v754_v46 = vld [vmem:[%s1901_s5] sm:$0xff] }
  0x99   : > { %v452_v56 = vmul.f32 %v448_v53, %v407_v47  ;;  %v472_v57 = vmul.f32 %v1259_v48, %v450_v49  ;;  %v473_v59 = vmul.f32 %v1259_v48, %v451_v50  ;;  %v494_v60 = vmul.f32 %v1260_v51, %v450_v49  ;;  %v755_v47 = vld [vmem:[%s1901_s5 + $0x8] sm:$0xff] }
  0x9a   : > { %v495_v61 = vmul.f32 %v1260_v51, %v451_v50  ;;  %v464_v62 = vmul.f32 %v1258_v52, %v450_v49  ;;  %v516_v5 = vmul.f32 %v1261_v55, %v450_v49  ;;  %v517_v6 = vmul.f32 %v1261_v55, %v451_v50  ;;  %1373 = vmatprep.subr.bf16.mxu1 %v1372_v45 }
  0x9b   : > { %v474_v0 = vmul.f32 %v1259_v48, %v452_v56  ;;  %v479_v1 = vrot.slane %v472_v57, 1  ;;  %v496_v3 = vmul.f32 %v1260_v51, %v452_v56  ;;  %v480_v4 = vrot.slane %v473_v59, 1  ;;  %v756_v51 = vld [vmem:[%s1901_s5 + $0x10] sm:$0xff]  ;;  %v758_v57 = vld [vmem:[%s1901_s5 + $0x20] sm:$0xff] }
  0x9c   : > { %v518_v7 = vmul.f32 %v1261_v55, %v452_v56  ;;  %v465_v8 = vmul.f32 %v1258_v52, %v451_v50  ;;  %v501_v11 = vrot.slane %v494_v60, 2  ;;  %v502_v13 = vrot.slane %v495_v61, 2  ;;  %v757_v52 = vld [vmem:[%s1901_s5 + $0x18] sm:$0xff]  ;;  %v775_v55 = vld [vmem:[%s1901_s5 + $0xa8] sm:$0xff]  ;;  %v776_v59 = vld [vmem:[%s1901_s5 + $0xb0] sm:$0xff] }
  0x9d   : > { %v482_v10 = vrot.slane %v474_v0, 1  ;;  %v504_v12 = vrot.slane %v496_v3, 2  ;;  %v538_v14 = vmul.f32 %v1262_v63, %v450_v49  ;;  %v539_v15 = vmul.f32 %v1262_v63, %v451_v50  ;;  %v773_v49 = vld [vmem:[%s1901_s5 + $0x98] sm:$0xff]  ;;  %v779_v3 = vld [vmem:[%s1901_s5 + $0xc8] sm:$0xff] }
  0x9e   : > { %v540_v16 = vmul.f32 %v1262_v63, %v452_v56  ;;  %v526_v18 = vrot.slane %v518_v7, 3  ;;  %v705_v19 = vrot.slane %v448_v53, 2  ;;  %v481_v20 = vsel %vm478_vm7, %v479_v1, %v480_v4  ;;  %v777_v61 = vld [vmem:[%s1901_s5 + $0xb8] sm:$0xff]  ;;  %v778_v1 = vld [vmem:[%s1901_s5 + $0xc0] sm:$0xff]  ;;  %v763_v7 = vld [vmem:[%s1901_s5 + $0x48] sm:$0xff] }
  0x9f   : > { %v483_v17 = vsel %vm478_vm7, %v480_v4, %v482_v10  ;;  %v523_v22 = vrot.slane %v516_v5, 3  ;;  %v524_v23 = vrot.slane %v517_v6, 3  ;;  %v505_v24 = vsel %vm500_vm6, %v502_v13, %v504_v12  ;;  %v761_v63 = vld [vmem:[%s1901_s5 + $0x38] sm:$0xff]  ;;  %v762_v6 = vld [vmem:[%s1901_s5 + $0x40] sm:$0xff] }
  0xa0   : > { %v487_v21 = vadd.f32 %v483_v17, %v465_v8  ;;  %v548_v25 = vrot.slane %v540_v16, 4  ;;  %v1646_v26 = vsel %vm500_vm6, %v703_v54, %v705_v19  ;;  %v486_v27 = vadd.f32 %v481_v20, %v464_v62  ;;  %v760_v62 = vld [vmem:[%s1901_s5 + $0x30] sm:$0xff]  ;;  %v781_v10 = vld [vmem:[%s1901_s5 + $0xd8] sm:$0xff]  ;;  %v783_v16 = vld [vmem:[%s1901_s5 + $0xe8] sm:$0xff] }
  0xa1   : > { %v545_v28 = vrot.slane %v538_v14, 4  ;;  %v546_v29 = vrot.slane %v539_v15, 4  ;;  %v503_v30 = vsel %vm500_vm6, %v501_v11, %v502_v13  ;;  %v527_v33 = vsel %vm522_vm8, %v524_v23, %v526_v18  ;;  %v780_v8 = vld [vmem:[%s1901_s5 + $0xd0] sm:$0xff]  ;;  %v765_v14 = vld [vmem:[%s1901_s5 + $0x58] sm:$0xff]  ;;  %v782_v15 = vld [vmem:[%s1901_s5 + $0xe0] sm:$0xff] }
  0xa2   : > { %v509_v31 = vadd.f32 %v505_v24, %v487_v21  ;;  %v508_v32 = vadd.f32 %v503_v30, %v486_v27  ;;  %v1650_v34 = vsel %vm500_vm6, %v702_v58, %v703_v54  ;;  %v525_v35 = vsel %vm522_vm8, %v523_v22, %v524_v23  ;;  %v774_v54 = vld [vmem:[%s1901_s5 + $0xa0] sm:$0xff]  ;;  %v759_v58 = vld [vmem:[%s1901_s5 + $0x28] sm:$0xff]  ;;  %v764_v13 = vld [vmem:[%s1901_s5 + $0x50] sm:$0xff] }
  0xa3   : > { %v549_v38 = vsel %vm544_vm9, %v546_v29, %v548_v25  ;;  %v547_v39 = vsel %vm544_vm9, %v545_v28, %v546_v29  ;;  %v1374_v48 = vpack.c.bf16 %v755_v47, %v754_v46  ;;  %v1378_v53 = vpack.c.bf16 %v757_v52, %v756_v51  ;;  %v766_v19 = vld [vmem:[%s1901_s5 + $0x60] sm:$0xff]  ;;  %v767_v20 = vld [vmem:[%s1901_s5 + $0x68] sm:$0xff]  ;;  %v784_v21 = vld [vmem:[%s1901_s5 + $0xf0] sm:$0xff] }
  0xa4   : > { %v531_v36 = vadd.f32 %v527_v33, %v509_v31  ;;  %v530_v37 = vadd.f32 %v525_v35, %v508_v32  ;;  %v1380_v56 = vpack.c.bf16 %v775_v55, %v774_v54  ;;  %v1382_v60 = vpack.c.bf16 %v759_v58, %v758_v57  ;;  %v785_v22 = vld [vmem:[%s1901_s5 + $0xf8] sm:$0xff]  ;;  %v768_v25 = vld [vmem:[%s1901_s5 + $0x70] sm:$0xff]  ;;  %v565_v30 = vld [vmem:[%s1900_s4] sm:$0x3] }
  0xa5   : > { %1375 = vmatpush3.bf16.msra.mxu1 %v1374_v48  ;;  %v1384_v0 = vpack.c.bf16 %v777_v61, %v776_v59  ;;  %v1386_v4 = vpack.c.bf16 %v761_v63, %v760_v62  ;;  %v1388_v5 = vpack.c.bf16 %v779_v3, %v778_v1  ;;  %v1390_v11 = vpack.c.bf16 %v763_v7, %v762_v6  ;;  %v769_v27 = vld [vmem:[%s1901_s5 + $0x78] sm:$0xff] }
  0xa6   : > { %v553_v40 = vadd.f32 %v549_v38, %v531_v36  ;;  %v552_v41 = vadd.f32 %v547_v39, %v530_v37  ;;  %v1392_v12 = vpack.c.bf16 %v781_v10, %v780_v8  ;;  %v1394_v17 = vpack.c.bf16 %v765_v14, %v764_v13 }
  0xa7   : > { %v1396_v18 = vpack.c.bf16 %v783_v16, %v782_v15  ;;  %v1398_v23 = vpack.c.bf16 %v767_v20, %v766_v19  ;;  %v1400_v24 = vpack.c.bf16 %v785_v22, %v784_v21  ;;  %v1402_v28 = vpack.c.bf16 %v769_v27, %v768_v25  ;;  %v867_v20 = vld [vmem:[%s1903_s7 + $0x18] sm:$0xff]  ;;  %v864_v22 = vld [vmem:[%s1903_s7] sm:$0xff]  ;;  %v869_v25 = vld [vmem:[%s1903_s7 + $0x28] sm:$0xff] }
  0xa8   : > { %v554_v42 = vpack.c.bf16 %v553_v40, %v552_v41  ;;  %v1750_v29 = vsub.s32 0, %v1579_v2  ;;  %v573_v31 = vsub.s32 1, %v1579_v2  ;;  %v871_v27 = vld [vmem:[%s1903_s7 + $0x38] sm:$0xff] }
  0xaa   : > { %1273 = vmatmul.mubr.msk.bf16.vlgmr.msra.gmra.mrb[0].mxu0 %vm627_vm10, %v554_v42  ;;  %v570_v32 = vrot.slane %v565_v30, %v1750_v29  ;;  %v574_v33 = vrot.slane %v565_v30, %v573_v31  ;;  %v868_v30 = vld [vmem:[%s1903_s7 + $0x20] sm:$0xff] }
  0xab   : > { %960 = vmatprep.mubr.f32.mxu0 %v1508_v9  ;;  %v772_v9 = vld [vmem:[%s1901_s5 + $0x90] sm:$0xff] }
  0xac   : > { %v1376_v50 = vpack.c.bf16 %v773_v49, %v772_v9 }
  0xae   : > { %1377 = vmatprep.subr.bf16.mxu1 %v1376_v50 }
  0xaf   : > { %1379 = vmatpush3.bf16.msra.mxu1 %v1378_v53 }
  0xb0   : > { %1381 = vmatprep.subr.bf16.mxu1 %v1380_v56 }
  0xb1   : > { %v750_v16 = vpop.permute.xlu1 %749 }
  0xb3   : > { %1383 = vmatpush3.bf16.msra.mxu1 %v1382_v60 }
  0xb4   : > { %1385 = vmatprep.subr.bf16.mxu1 %v1384_v0 }
  0xb7   : > { %1387 = vmatpush3.bf16.msra.mxu1 %v1386_v4 }
  0xb8   : > { %1389 = vmatprep.subr.bf16.mxu1 %v1388_v5 }
  0xbb   : > { %1391 = vmatpush3.bf16.msra.mxu1 %v1390_v11 }
  0xbc   : > { %1393 = vmatprep.subr.bf16.mxu1 %v1392_v12 }
  0xbf   : > { %1395 = vmatpush3.bf16.msra.mxu1 %v1394_v17 }
  0xc0   : > { %1397 = vmatprep.subr.bf16.mxu1 %v1396_v18 }
  0xc3   : > { %1399 = vmatpush3.bf16.msra.mxu1 %v1398_v23  ;;  %v866_v23 = vld [vmem:[%s1903_s7 + $0x10] sm:$0xff] }
  0xc4   : > { %1401 = vmatprep.subr.bf16.mxu1 %v1400_v24  ;;  %v1406_v24 = vpack.c.bf16 %v866_v23, %v864_v22 }
  0xc7   : > { %1403 = vmatpush3.bf16.msra.mxu1 %v1402_v28  ;;  %v1408_v28 = vpack.c.bf16 %v871_v27, %v869_v25 }
 0x17d   : > { %v665_v35 = vpop.f32.mrb[0].mxu0 }
 0x17e   : > { %v666_v36 = vadd.f32 %v665_v35, %v570_v32  ;;  %v667_v37 = vpop.f32.mrb[1].mxu0  ;;  %v873_v35 = vld [vmem:[%s1903_s7 + $0x48] sm:$0xff] }
 0x17f   : > { %v668_v38 = vadd.f32 %v667_v37, %v574_v33  ;;  %v669_v39 = vpop.f32.mrb[2].mxu0  ;;  %v872_v37 = vld [vmem:[%s1903_s7 + $0x40] sm:$0xff] }
 0x180   : > { %v1274_v40 = vmul.f32 -1.442695, %v666_v36  ;;  %v670_v41 = vadd.f32 %v669_v39, %v570_v32  ;;  %v671_v42 = vpop.f32.mrb[3].mxu0  ;;  %v870_v32 = vld [vmem:[%s1903_s7 + $0x30] sm:$0xff] }
 0x181   : > { %v1275_v43 = vmul.f32 -1.442695, %v668_v38  ;;  %v672_v44 = vadd.f32 %v671_v42, %v574_v33  ;;  %v1410_v33 = vpack.c.bf16 %v870_v32, %v868_v30  ;;  %v874_v39 = vld [vmem:[%s1903_s7 + $0x50] sm:$0xff] }
 0x182   : > { %1471 = vpow2.f32 %v1274_v40  ;;  %v1276_v45 = vmul.f32 -1.442695, %v670_v41  ;;  %v877_v40 = vld [vmem:[%s1903_s7 + $0x68] sm:$0xff]  ;;  %v1414_v42 = vpack.c.bf16 %v874_v39, %v872_v37 }
 0x183   : > { %1473 = vpow2.f32 %v1275_v43  ;;  %v1277_v46 = vmul.f32 -1.442695, %v672_v44 }
 0x184   : > { %1475 = vpow2.f32 %v1276_v45  ;;  %v878_v45 = vld [vmem:[%s1903_s7 + $0x70] sm:$0xff] }
 0x185   : > { %1477 = vpow2.f32 %v1277_v46 }
 0x18c   : > { %v1472_v47 = vpop.eup %1471 }
 0x18d   : > { %v1474_v48 = vpop.eup %1473  ;;  %v686_v9 = vadd.f32 1.0, %v1472_v47 }
 0x18e   : > { %v1476_v49 = vpop.eup %1475  ;;  %v687_v50 = vadd.f32 1.0, %v1474_v48  ;;  %v786_v48 = vld [vmem:[%s1902_s6] sm:$0x1] }
 0x18f   : > { %v1478_v51 = vpop.eup %1477  ;;  %1479 = vrcp.f32 %v686_v9  ;;  %v688_v52 = vadd.f32 1.0, %v1476_v49 }
 0x190   : > { %1481 = vrcp.f32 %v687_v50  ;;  %v689_v53 = vadd.f32 1.0, %v1478_v51 }
 0x191   : > { %1483 = vrcp.f32 %v688_v52 }
 0x192   : > { %1485 = vrcp.f32 %v689_v53 }
 0x199   : > { %v1480_v54 = vpop.eup %1479 }
 0x19a   : > { %v1482_v55 = vpop.eup %1481  ;;  %v1759_v56 = vmul.f32 %v1480_v54, %v666_v36  ;;  %v875_v36 = vld [vmem:[%s1903_s7 + $0x58] sm:$0xff] }
 0x19b   : > { %v1484_v57 = vpop.eup %1483  ;;  %v1761_v58 = vmul.f32 %v1482_v55, %v668_v38  ;;  %v1412_v38 = vpack.c.bf16 %v875_v36, %v873_v35 }
 0x19c   : > { %v1486_v59 = vpop.eup %1485  ;;  %v1763_v60 = vmul.f32 %v1484_v57, %v670_v41  ;;  %v709_v62 = vmul.f32 %v1650_v34, %v1759_v56  ;;  %v879_v41 = vld [vmem:[%s1903_s7 + $0x78] sm:$0xff]  ;;  %v1453_v57 = vld [vmem:[%s1905_s9 + $0x40] sm:$0xff]  }
 0x19d   : > { %v1765_v61 = vmul.f32 %v1486_v59, %v672_v44  ;;  %v710_v0 = vmul.f32 %v1650_v34, %v1761_v58  ;;  %v1416_v43 = vpack.c.bf16 %v879_v41, %v877_v40  ;;  %v876_v44 = vld [vmem:[%s1903_s7 + $0x60] sm:$0xff]  ;;  %1350 = vmatprep.subr.bf16.mxu1 %v1453_v57 }
 0x19e   : > { %v711_v63 = vmul.f32 %v1646_v26, %v1763_v60  ;;  %v1418_v46 = vpack.c.bf16 %v878_v45, %v876_v44  ;;  %v1454_v59 = vld [vmem:[%s1905_s9] sm:$0xff]  }
 0x19f   : > { %v712_v1 = vmul.f32 %v1646_v26, %v1765_v61  ;;  %v865_v26 = vld [vmem:[%s1903_s7 + $0x8] sm:$0xff] }
 0x1a0   : > { %v713_v3 = vadd.f32 %v711_v63, %v709_v62  ;;  %v1404_v21 = vpack.c.bf16 %v867_v20, %v865_v26  ;;  %v1455_v62 = vld [vmem:[%s1905_s9 + $0x48] sm:$0xff]  }
 0x1a1   : > { %v720_v4 = vadd.f32 %v712_v1, %v710_v0  ;;  %v1456_v63 = vld [vmem:[%s1905_s9 + $0x8] sm:$0xff]   ;;  %v1457_v0 = vld [vmem:[%s1905_s9 + $0x50] sm:$0xff]  }
 0x1a2   : > { %v714_v5 = vrot.slane %v713_v3, 4  ;;  %1405 = vmatprep.subr.bf16.mxu0 %v1404_v21  ;;  %v1458_v1 = vld [vmem:[%s1905_s9 + $0x10] sm:$0xff]  }
 0x1a3   : > { %v721_v6 = vrot.slane %v720_v4, 4  ;;  %1407 = vmatpush1.bf16.msra.mxu0 %v1406_v24 }
 0x1a4   : > { %v715_v7 = vadd.f32 %v714_v5, %v713_v3  ;;  %1409 = vmatprep.subr.bf16.mxu0 %v1408_v28  ;;  %v1459_v3 = vld [vmem:[%s1905_s9 + $0x58] sm:$0xff]   ;;  %v1461_v5 = vld [vmem:[%s1905_s9 + $0x60] sm:$0xff]  }
 0x1a5   : > { %v722_v8 = vadd.f32 %v721_v6, %v720_v4  ;;  %v1460_v4 = vld [vmem:[%s1905_s9 + $0x18] sm:$0xff]   ;;  %v1462_v6 = vld [vmem:[%s1905_s9 + $0x20] sm:$0xff]  }
 0x1a6   : > { %v716_v10 = vrot.slane %v715_v7, 2 }
 0x1a7   : > { %v723_v11 = vrot.slane %v722_v8, 2  ;;  %1411 = vmatpush1.bf16.msra.mxu0 %v1410_v33 }
 0x1a8   : > { %v717_v12 = vadd.f32 %v716_v10, %v715_v7  ;;  %1413 = vmatprep.subr.bf16.mxu0 %v1412_v38  ;;  %v1463_v7 = vld [vmem:[%s1905_s9 + $0x68] sm:$0xff]   ;;  %v1465_v10 = vld [vmem:[%s1905_s9 + $0x70] sm:$0xff]  }
 0x1a9   : > { %v724_v13 = vadd.f32 %v723_v11, %v722_v8  ;;  %v1464_v8 = vld [vmem:[%s1905_s9 + $0x28] sm:$0xff]   ;;  %v1466_v11 = vld [vmem:[%s1905_s9 + $0x30] sm:$0xff]  }
 0x1aa   : > { %v718_v14 = vrot.slane %v717_v12, 1 }
 0x1ab   : > { %v725_v15 = vrot.slane %v724_v13, 1  ;;  %1415 = vmatpush1.bf16.msra.mxu0 %v1414_v42 }
 0x1ac   : > { %v719_v17 = vadd.f32 %v718_v14, %v717_v12  ;;  %1417 = vmatprep.subr.bf16.mxu0 %v1416_v43  ;;  %v1467_v12 = vld [vmem:[%s1905_s9 + $0x78] sm:$0xff]   ;;  %v880_v14 = vld [vmem:[%s1904_s8] sm:$0x3] }
 0x1ad   : > { %v726_v18 = vadd.f32 %v725_v15, %v724_v13  ;;  %v1468_v13 = vld [vmem:[%s1905_s9 + $0x38] sm:$0xff]   ;;  %v885_v15 = vrot.slane %v880_v14, %v1750_v29 }
 0x1ae   : > { %v752_v34 = vmul.f32 %v750_v16, %v719_v17 }
 0x1af   : > { %v753_v19 = vmul.f32 %v750_v16, %v726_v18  ;;  %1419 = vmatpush1.bf16.msra.mxu0 %v1418_v46  ;;  %v889_v16 = vrot.slane %v880_v14, %v573_v31 }
 0x1b1   : > { %851 = vmatprep.mubr.f32.mxu1 %v753_v19 }
 0x1b2   : > { %852 = vmatmul.mubr.f32.vlgmr.msra.gmra.mrb[0].mxu1 %v752_v34 }
 0x1b3   : > { %1351 = vmatpush3.bf16.msra.mxu1 %v1454_v59 }
 0x1b4   : > { %1352 = vmatprep.subr.bf16.mxu1 %v1455_v62 }
 0x1b7   : > { %1353 = vmatpush3.bf16.msra.mxu1 %v1456_v63 }
 0x1b8   : > { %1354 = vmatprep.subr.bf16.mxu1 %v1457_v0 }
 0x1bb   : > { %1355 = vmatpush3.bf16.msra.mxu1 %v1458_v1 }
 0x1bc   : > { %1356 = vmatprep.subr.bf16.mxu1 %v1459_v3 }
 0x1bf   : > { %1357 = vmatpush3.bf16.msra.mxu1 %v1460_v4 }
 0x1c0   : > { %1358 = vmatprep.subr.bf16.mxu1 %v1461_v5 }
 0x1c3   : > { %1359 = vmatpush3.bf16.msra.mxu1 %v1462_v6 }
 0x1c4   : > { %1360 = vmatprep.subr.bf16.mxu1 %v1463_v7 }
 0x1c7   : > { %1361 = vmatpush3.bf16.msra.mxu1 %v1464_v8 }
 0x1c8   : > { %1362 = vmatprep.subr.bf16.mxu1 %v1465_v10 }
 0x1cb   : > { %1363 = vmatpush3.bf16.msra.mxu1 %v1466_v11 }
 0x1cc   : > { %1364 = vmatprep.subr.bf16.mxu1 %v1467_v12 }
 0x1cf   : > { %1365 = vmatpush3.bf16.msra.mxu1 %v1468_v13 }
 0x285   : > { %v1347_v47 = vpop.f32.mrb[0].mxu1 }
 0x286   : > { %v1348_v9 = vpop.f32.mrb[1].mxu1 }
 0x287   : > { %v1349_v49 = vadd.f32 %v1348_v9, %v1347_v47 }
 0x289   : > { %v854_v50 = vadd.f32 %v1349_v49, %v786_v48 }
 0x28b   : > { %v1278_v51 = vmul.f32 -1.442695, %v854_v50 }
 0x28d   : > { %1487 = vpow2.f32 %v1278_v51 }
 0x297   : > { %v1488_v52 = vpop.eup %1487 }
 0x298   : > { %v860_v53 = vadd.f32 1.0, %v1488_v52 }
 0x29a   : > { %1489 = vrcp.f32 %v860_v53 }
 0x2a4   : > { %v1490_v54 = vpop.eup %1489 }
 0x2a5   : > { %v863_v55 = vmul.f32 %v1490_v54, %v854_v50 }
 0x2a7   : > { %1279 = vmatmul.mubr.msk.f32.vlgmr.msra.gmra.mrb[4].mxu0 %vm892_vm11, %v863_v55 }
 0x37a   : > { %v962_v17 = vpop.f32.mrb[4].mxu0 }
 0x37b   : > { %v963_v18 = vadd.f32 %v962_v17, %v885_v15  ;;  %v964_v19 = vpop.f32.mrb[5].mxu0 }
 0x37c   : > { %v965_v34 = vadd.f32 %v964_v19, %v889_v16 }
 0x37d   : > { %v1280_v26 = vmul.f32 -1.442695, %v963_v18 }
 0x37e   : > { %v1281_v20 = vmul.f32 -1.442695, %v965_v34 }
 0x37f   : > { %1491 = vpow2.f32 %v1280_v26 }
 0x380   : > { %1493 = vpow2.f32 %v1281_v20 }
 0x389   : > { %v1492_v21 = vpop.eup %1491 }
 0x38a   : > { %v1494_v22 = vpop.eup %1493  ;;  %v973_v23 = vadd.f32 1.0, %v1492_v21 }
 0x38b   : > { %v974_v24 = vadd.f32 1.0, %v1494_v22 }
 0x38c   : > { %1495 = vrcp.f32 %v973_v23 }
 0x38d   : > { %1497 = vrcp.f32 %v974_v24 }
 0x396   : > { %v1496_v25 = vpop.eup %1495 }
 0x397   : > { %v1498_v27 = vpop.eup %1497  ;;  %v982_v28 = vrot.slane %v1496_v25, %v1750_v29 }
 0x398   : > { %v986_v2 = vrot.slane %v1498_v27, %v1750_v29  ;;  %v1282_v29 = vld [vmem:[%s1906_s10] ss:$0 sm:$0xff] }
 0x399   : > { %v987_v31 = vmul.f32 %v982_v28, %v1759_v56  ;;  %v989_v30 = vmul.f32 %v982_v28, %v1763_v60 }
 0x39a   : > { %v988_v32 = vmul.f32 %v986_v2, %v1761_v58  ;;  %v990_v33 = vmul.f32 %v986_v2, %v1765_v61 }
 0x39b   : > { %v991_v36 = vpack.c.bf16 %v989_v30, %v987_v31 }
 0x39c   : > { %v992_v35 = vpack.c.bf16 %v990_v33, %v988_v32 }
 0x39e   : > { %1160 = vmatprep.mubr.bf16.mxu1 %v992_v35 }
 0x39f   : > { %1161 = vmatmul.mubr.bf16.vlgmr.msra.gmra.mrb[4].mxu1 %v991_v36 }
 0x472   : > { %v1366_v37 = vpop.f32.mrb[4].mxu1 }
 0x473   : > { %v1367_v38 = vpop.f32.mrb[5].mxu1 }
 0x474   : > { %v1368_v39 = vadd.f32 %v1367_v38, %v1366_v37  ;;  %v1369_v40 = vpop.f32.mrb[6].mxu1 }
 0x475   : > { %v1370_v41 = vpop.f32.mrb[7].mxu1 }
 0x476   : > { %v1371_v56 = vadd.f32 %v1370_v41, %v1369_v40  ;;  %v1163_v60 = vadd.f32 %v1368_v39, %v1282_v29 }
 0x478   : > { %v1166_v42 = vadd.f32 %v1371_v56, %v1282_v29 }
 0x47a   : > { %v1313_v58 = vpack.c.bf16 %v1166_v42, %v1163_v60 }
 0x47c   : > { %1314 = vst [vmem:[%s400_s25] sm:$0xff] %v1313_v58  }
 0x47d PF: > { %s21_s17 = sadd.s32 1, %s1505_s17  }
 0x47e   : > { %p18_p4 = scmp.ge.s32.totalorder %s21_s17, 4  }
 0x480   :  { %20 = sbr.rel (!%p18_p4) target bundleno = 1 (0x1), region = 97 }

</bundles_post_ra>
